<compile_context>
chip_gen: v6e
topology: v6e:2x2x1
jax: 0.10.0
libtpu: 0.0.40
codegen_flags: <defaults>
</compile_context>

<pallas_src>
import functools

import jax
import jax.numpy as jnp
from jax import lax
from jax.experimental import pallas as pl
from jax.experimental.pallas import tpu as pltpu


def _round_up(x, m):
    return ((x + m - 1) // m) * m


def _cdiv(a, b):
    return -(-a // b)


def _tile_and_pad(dim, align, cap):
    """Tile size (multiple of `align`, <= cap) minimizing padding; returns (tile, padded)."""
    d = _round_up(max(int(dim), 1), align)
    cap = max((int(cap) // align) * align, align)
    t = min(d, cap)
    n = _cdiv(d, t)
    t = _round_up(_cdiv(d, n), align)   # balance tiles -> minimal padding
    return t, n * t


def fc_layer_kernel(x_ref, w_ref, b_ref, o_ref, acc_ref, *,
                    tk, precision, x_resident):
    """One (tm, tn) output tile, accumulated over the K grid axis.

    x_ref:   [tm, K_pad] resident activation slab (or [tm, tk] when streaming)
    w_ref:   [tk, tn]    weight tile, MXU-native [K, N] layout
    b_ref:   [1,  tn]    bias tile (f32)
    o_ref:   [tm, tn]    output tile
    acc_ref: [tm, tn]    f32 VMEM accumulator scratch
    """
    k = pl.program_id(2)

    @pl.when(k == 0)
    def _init():
        acc_ref[...] = jnp.zeros_like(acc_ref)

    if x_resident:
        start = pl.multiple_of(k * tk, 128)
        x = x_ref[:, pl.ds(start, tk)]
    else:
        x = x_ref[...]

    acc_ref[...] += jnp.dot(x, w_ref[...],
                            preferred_element_type=jnp.float32,
                            precision=precision)

    @pl.when(k == pl.num_programs(2) - 1)
    def _finalize():
        # Bias add once per output tile, cast to the output dtype.
        o_ref[...] = (acc_ref[...] + b_ref[...]).astype(o_ref.dtype)


def prepare_fc_params(weight, bias, *, compute_dtype=jnp.bfloat16,
                      tn_max=512, tk_max=1024):
    """One-time weight/bias prep (cast + pad + transpose to [K_pad, N_pad]).

    Cache the result across calls: re-doing this per call costs a full extra
    HBM pass over the weight.
    """
    D_out, D_in = weight.shape
    assert bias.shape == (D_out,)

    tn, N_pad = _tile_and_pad(D_out, 128, tn_max)
    # v7x has 2 TensorCores: if there would be only one (i, j) tile, split N in
    # two (only when it divides cleanly, so no extra padding is introduced).
    if N_pad // tn == 1 and N_pad >= 256 and N_pad % 256 == 0:
        tn = N_pad // 2

    tk, K_pad = _tile_and_pad(D_in, 128, tk_max)

    wp = jnp.pad(weight, ((0, N_pad - D_out), (0, K_pad - D_in)))
    wp = wp.astype(compute_dtype).T                      # [K_pad, N_pad]
    bp = jnp.pad(bias.astype(jnp.float32), (0, N_pad - D_out)).reshape(1, N_pad)

    plan = (tn, tk, D_out, D_in, jnp.dtype(compute_dtype))
    return wp, bp, plan


def fc_layer_apply(x, wp, bp, plan, use_activation=True, *,
                   tm_max=512, x_slab_budget_bytes=8 << 20):
    """dropout(0.0) -> [tanh] -> linear using pre-prepared weight/bias."""
    tn, tk, D_out, D_in, compute_dtype = plan
    K_pad, N_pad = wp.shape
    B, D_in_x = x.shape
    assert D_in_x == D_in
    out_dtype = x.dtype

    itemsize = jnp.dtype(compute_dtype).itemsize
    sublane = (4 // itemsize) * 8          # 8 rows for f32, 16 for bf16 vregs
    tm, M_pad = _tile_and_pad(B, sublane, tm_max)

    # TODO(synk): dropout with rate > 0 in training mode would need
    # pltpu.prng_seed / prng_random_bits; default dropout_rate=0.0 is identity.
    xc = x
    if use_activation:
        # Hoisted activation: tanh in f32 BEFORE any low-precision cast
        # (matches the reference numerics); fuses with the pad/cast under jit.
        xc = jnp.tanh(xc.astype(jnp.float32))
    xp = jnp.pad(xc.astype(compute_dtype), ((0, M_pad - B), (0, K_pad - D_in)))

    # Keep the x slab resident across the j (and k) grid axes when it fits.
    x_resident = (tm * K_pad * itemsize) <= x_slab_budget_bytes
    if x_resident:
        x_spec = pl.BlockSpec((tm, K_pad), lambda i, j, k: (i, 0))
    else:
        x_spec = pl.BlockSpec((tm, tk), lambda i, j, k: (i, k))

    precision = (lax.Precision.HIGHEST
                 if jnp.dtype(compute_dtype) == jnp.dtype(jnp.float32)
                 else lax.Precision.DEFAULT)

    grid_i = M_pad // tm
    grid_j = N_pad // tn
    grid_k = K_pad // tk
    grid = (grid_i, grid_j, grid_k)

    # VMEM footprint (double-buffered inputs/outputs + f32 accumulator).
    x_buf = 2 * tm * (K_pad if x_resident else tk) * itemsize
    w_buf = 2 * tk * tn * itemsize
    b_buf = 2 * 8 * tn * 4
    o_buf = 2 * tm * tn * jnp.dtype(out_dtype).itemsize
    acc_buf = tm * tn * 4
    vmem_est = x_buf + w_buf + b_buf + o_buf + acc_buf
    vmem_limit = int(min(max(vmem_est + (4 << 20), 32 << 20), 60 << 20))

    out_itemsize = jnp.dtype(out_dtype).itemsize
    cost = pl.CostEstimate(
        flops=2 * M_pad * N_pad * K_pad,
        transcendentals=0,                    # tanh runs outside the kernel
        bytes_accessed=(
            M_pad * K_pad * itemsize * (1 if x_resident else grid_j)  # x
            + K_pad * N_pad * itemsize * grid_i                       # weight
            + N_pad * 4 * grid_i                                      # bias
            + M_pad * N_pad * out_itemsize),                          # output
    )

    out_padded = pl.pallas_call(
        functools.partial(fc_layer_kernel,
                          tk=tk, precision=precision, x_resident=x_resident),
        out_shape=jax.ShapeDtypeStruct((M_pad, N_pad), out_dtype),
        grid_spec=pltpu.PrefetchScalarGridSpec(
            num_scalar_prefetch=0,
            grid=grid,
            in_specs=[
                x_spec,                                               # x
                pl.BlockSpec((tk, tn), lambda i, j, k: (k, j)),       # weight [K,N]
                pl.BlockSpec((1, tn), lambda i, j, k: (0, j)),        # bias
            ],
            out_specs=pl.BlockSpec((tm, tn), lambda i, j, k: (i, j)),
            scratch_shapes=[pltpu.VMEM((tm, tn), jnp.float32)],
        ),
        compiler_params=pltpu.CompilerParams(
            dimension_semantics=("parallel", "parallel", "arbitrary"),
            vmem_limit_bytes=vmem_limit,
        ),
        cost_estimate=cost,
    )(xp, wp, bp)

    return out_padded[:B, :D_out]


def fc_layer(x, weight, bias, use_activation=True, *,
             compute_dtype=jnp.bfloat16,
             tm_max=512, tn_max=512, tk_max=1024):
    """Convenience wrapper: prepare (ideally cached by callers) + apply."""
    wp, bp, plan = prepare_fc_params(weight, bias, compute_dtype=compute_dtype,
                                     tn_max=tn_max, tk_max=tk_max)
    return fc_layer_apply(x, wp, bp, plan, use_activation=use_activation,
                          tm_max=tm_max)


if __name__ == "__main__":
    # Small shapes consistent with the module: batch=8, input_dim=32, output_dim=32.
    B, D_in, D_out = 8, 32, 32

    key = jax.random.PRNGKey(0)
    kx, kw, kb = jax.random.split(key, 3)

    x = jax.random.normal(kx, (B, D_in), dtype=jnp.float32)

    # Deterministic nn.Linear-style init: U(-1/sqrt(D_in), 1/sqrt(D_in)).
    bound = 1.0 / (D_in ** 0.5)
    weight = jax.random.uniform(kw, (D_out, D_in), minval=-bound, maxval=bound,
                                dtype=jnp.float32)
    bias = jax.random.uniform(kb, (D_out,), minval=-bound, maxval=bound,
                              dtype=jnp.float32)

    # Plain-JAX references (dropout rate 0.0 -> identity).
    ref_act = jnp.matmul(jnp.tanh(x), weight.T,
                         precision=lax.Precision.HIGHEST) + bias
    ref_noact = jnp.matmul(x, weight.T,
                           precision=lax.Precision.HIGHEST) + bias

    # f32 compute path: tight check.
    out_f32 = jax.block_until_ready(
        fc_layer(x, weight, bias, use_activation=True,
                 compute_dtype=jnp.float32))
    assert out_f32.shape == (B, D_out)
    assert jnp.allclose(out_f32, ref_act, atol=1e-5, rtol=1e-5)

    # Default bf16-MXU path: loose check (bf16 input rounding; tanh is in f32).
    out_bf16 = jax.block_until_ready(
        fc_layer(x, weight, bias, use_activation=True))
    assert out_bf16.shape == (B, D_out)
    assert jnp.allclose(out_bf16, ref_act, atol=5e-2, rtol=5e-2)

    # Prepare-once / apply-many path + use_activation=False.
    wp, bp, plan = prepare_fc_params(weight, bias, compute_dtype=jnp.float32)
    out_noact = jax.block_until_ready(
        fc_layer_apply(x, wp, bp, plan, use_activation=False))
    assert jnp.allclose(out_noact, ref_noact, atol=1e-5, rtol=1e-5)

    print("KERNEL_OK")
</pallas_src>

<mosaic_0001>
module attributes {stable_mosaic.version = 11 : i64} {
  func.func @fc_layer_kernel(%arg0: i32, %arg1: i32, %arg2: i32, %arg3: memref<8x128xf32, #tpu.memory_space<vmem>>, %arg4: memref<128x128xf32, #tpu.memory_space<vmem>>, %arg5: memref<1x128xf32, #tpu.memory_space<vmem>>, %arg6: memref<8x128xf32, #tpu.memory_space<vmem>>, %arg7: memref<8x128xf32, #tpu.memory_space<vmem>>) attributes {dimension_semantics = [#tpu.dimension_semantics<parallel>, #tpu.dimension_semantics<parallel>, #tpu.dimension_semantics<arbitrary>], iteration_bounds = array<i64: 1, 1, 1>, scalar_prefetch = 0 : i64, scratch_operands = 1 : i64, tpu.core_type = #tpu.core_type<tc>, window_params = [{transform_indices = @transform_0, window_bounds = array<i64: 8, 128>}, {transform_indices = @transform_1, window_bounds = array<i64: 128, 128>}, {transform_indices = @transform_2, window_bounds = array<i64: 1, 128>}, {transform_indices = @transform_3, window_bounds = array<i64: 8, 128>}]} {
    %c0_i32 = arith.constant 0 : i32
    %0 = arith.cmpi eq, %arg2, %c0_i32 : i32
    %1 = arith.extui %0 : i1 to i32
    %c0_i32_0 = arith.constant 0 : i32
    %2 = arith.cmpi ne, %1, %c0_i32_0 : i32
    scf.if %2 {
      %cst_9 = arith.constant 0.000000e+00 : f32
      %15 = vector.broadcast %cst_9 : f32 to vector<8x128xf32>
      %c0_10 = arith.constant 0 : index
      %c0_11 = arith.constant 0 : index
      %16 = vector.load %arg7[%c0_10, %c0_11] : memref<8x128xf32, #tpu.memory_space<vmem>>, vector<8x128xf32>
      tpu.vector_store %arg7[%c0_10, %c0_11], %15 {strides = array<i32>} : memref<8x128xf32, #tpu.memory_space<vmem>>, vector<8x128xf32>,
    } else {
    }
    %c128_i32 = arith.constant 128 : i32
    %3 = arith.muli %arg2, %c128_i32 : i32
    %4 = tpu.assume_multiple %3, 128 : i32
    %c0 = arith.constant 0 : index
    %5 = arith.index_cast %4 : i32 to index
    %6 = vector.load %arg3[%c0, %5] : memref<8x128xf32, #tpu.memory_space<vmem>>, vector<8x128xf32>
    %c0_1 = arith.constant 0 : index
    %c0_2 = arith.constant 0 : index
    %7 = vector.load %arg7[%c0_1, %c0_2] : memref<8x128xf32, #tpu.memory_space<vmem>>, vector<8x128xf32>
    %c0_3 = arith.constant 0 : index
    %c0_4 = arith.constant 0 : index
    %8 = vector.load %arg4[%c0_3, %c0_4] : memref<128x128xf32, #tpu.memory_space<vmem>>, vector<128x128xf32>
    %cst = arith.constant dense<0.000000e+00> : vector<8x128xf32>
    %9 = tpu.matmul %6, %8, %cst {dimension_numbers = #tpu.dot_dimension_numbers<[1], [0], [0], [1], [0, 0, 1, 1], [], []>, precision = #tpu.contract_precision<fp32>} : vector<8x128xf32>, vector<128x128xf32>, vector<8x128xf32> -> vector<8x128xf32>
    %10 = arith.addf %7, %9 : vector<8x128xf32>
    %c0_5 = arith.constant 0 : index
    %c0_6 = arith.constant 0 : index
    %11 = vector.load %arg7[%c0_5, %c0_6] : memref<8x128xf32, #tpu.memory_space<vmem>>, vector<8x128xf32>
    tpu.vector_store %arg7[%c0_5, %c0_6], %10 {strides = array<i32>} : memref<8x128xf32, #tpu.memory_space<vmem>>, vector<8x128xf32>,
    %c0_i32_7 = arith.constant 0 : i32
    %12 = arith.cmpi eq, %arg2, %c0_i32_7 : i32
    %13 = arith.extui %12 : i1 to i32
    %c0_i32_8 = arith.constant 0 : i32
    %14 = arith.cmpi ne, %13, %c0_i32_8 : i32
    scf.if %14 {
      %c0_9 = arith.constant 0 : index
      %c0_10 = arith.constant 0 : index
      %15 = vector.load %arg7[%c0_9, %c0_10] : memref<8x128xf32, #tpu.memory_space<vmem>>, vector<8x128xf32>
      %c0_11 = arith.constant 0 : index
      %c0_12 = arith.constant 0 : index
      %16 = vector.load %arg5[%c0_11, %c0_12] : memref<1x128xf32, #tpu.memory_space<vmem>>, vector<1x128xf32>
      %17 = vector.broadcast %16 : vector<1x128xf32> to vector<8x128xf32>
      %18 = arith.addf %15, %17 : vector<8x128xf32>
      %c0_13 = arith.constant 0 : index
      %c0_14 = arith.constant 0 : index
      %19 = vector.load %arg6[%c0_13, %c0_14] : memref<8x128xf32, #tpu.memory_space<vmem>>, vector<8x128xf32>
      tpu.vector_store %arg6[%c0_13, %c0_14], %18 {strides = array<i32>} : memref<8x128xf32, #tpu.memory_space<vmem>>, vector<8x128xf32>,
    } else {
    }
    return
  }
  func.func @transform_0(%arg0: i32, %arg1: i32, %arg2: i32) -> (i32, i32) {
    %c0_i32 = arith.constant 0 : i32
    %c0_i32_0 = arith.constant 0 : i32
    return %arg0, %c0_i32 : i32, i32
  }
  func.func @transform_1(%arg0: i32, %arg1: i32, %arg2: i32) -> (i32, i32) {
    %c0_i32 = arith.constant 0 : i32
    return %arg2, %arg1 : i32, i32
  }
  func.func @transform_2(%arg0: i32, %arg1: i32, %arg2: i32) -> (i32, i32) {
    %c0_i32 = arith.constant 0 : i32
    %c0_i32_0 = arith.constant 0 : i32
    return %c0_i32, %arg1 : i32, i32
  }
  func.func @transform_3(%arg0: i32, %arg1: i32, %arg2: i32) -> (i32, i32) {
    %c0_i32 = arith.constant 0 : i32
    return %arg0, %arg1 : i32, i32
  }
}

</mosaic_0001>

<bundles_post_ra>
// kernel: tpu_custom_call.1
= control target key start
LH: loop header
LB: loop body
LE: loop exit
PB: predicated region body
PF: predicated region fallthrough
CT: control target
= control target key end

     0   :  { %8 = vsyncpa [#allocation4], 0  ;;  %s1529_s0 = inlined_call_operand.hbm [shape: f32[8,128], index: 0, kind: input, shape index: {}]   ;;  %s1530_s1 = inlined_call_operand.hbm [shape: f32[128,128], index: 1, kind: input, shape index: {}]   ;;  %s1531_s2 = inlined_call_operand.vmem [shape: f32[1,128], index: 2, kind: input, shape index: {}]   ;;  %s1532_s3 = inlined_call_operand.hbm [shape: f32[8,128], index: 3, kind: output, shape index: {}]  }
   0x1   :  { %9 = vsyncpa [#allocation7], 0 }
   0x2   :  { %10 = vsyncpa [#allocation5], 0  ;;  %s1127_s12 = smov [#allocation3]   ;;  %s1128_s14 = smov [#allocation6]  }
   0x3   :  { %s17_s13 = sshll.u32 %s1127_s12, 4  ;;  %s26_s15 = sshll.u32 %s1128_s14, 4  ;;  %s18_s13 = int_to_ptr.vmem [resolvable:$true] %s17_s13  ;;  %s27_s15 = int_to_ptr.vmem [resolvable:$true] %s26_s15 }
   0x4   :  { %s1069_s16 = scalar_lea.vmem %s18_s13, 128  ;;  %p1074_p1 = scmp.lt.s32.totalorder %s18_s13, %s18_s13 }
   0x5   :  { %p1070_p0 = scmp.ne.s32.totalorder %s18_s13, %s1069_s16  ;;  %p1075_p2 = scmp.lt.s32.totalorder %s1069_s16, %s1069_s16 }
   0x7   :  { %p1076_p3 = por %p1075_p2, %p1074_p1 }
   0x9   :  { %p1077_p4 = pnand %p1076_p3, %p1070_p0 }
   0xb   :  { %1080 = shalt.err (!%p1077_p4)
}
   0xc   :  { %20 = dma.hbm_to_vmem [thread:$0]  %s1529_s0, 128, %s18_s13, [#allocation4]  }
   0xd   :  { %s1089_s19 = scalar_lea.vmem %s27_s15, 2048  ;;  %p1094_p6 = scmp.lt.s32.totalorder %s27_s15, %s27_s15 }
   0xe   :  { %p1090_p5 = scmp.ne.s32.totalorder %s27_s15, %s1089_s19  ;;  %p1095_p7 = scmp.lt.s32.totalorder %s1089_s19, %s1089_s19 }
  0x10   :  { %p1096_p8 = por %p1095_p7, %p1094_p6 }
  0x12   :  { %p1097_p9 = pnand %p1096_p8, %p1090_p5 }
  0x14   :  { %1100 = shalt.err (!%p1097_p9)
}
  0x15   :  { %s1129_s20 = smov 128   ;;  %s1130_s21 = smov 8  }
  0x16   :  { %32 = dma.hbm_to_vmem [thread:$0]  %s1530_s1, 2048, %s27_s15, [#allocation7], %s1129_s20, %s1129_s20, %s1130_s21  }
  0x17   :  { %1121 = dma.done.wait [#allocation4], 128  }
  0x18   :  { %1122 = vsyncadd [#allocation4], 4294967168 }
  0x19   :  { %1123 = dma.done.wait [#allocation7], 2048  }
  0x1a   :  { %1124 = vsyncadd [#allocation7], 4294965248  ;;  %v1131_v0 = vmov 0.0   ;;  %vm1132_vm0 = vmmov 0   ;;  %v67_v1 = vld [vmem:[#allocation6 + $0x78] sm:$0xff]  ;;  %v66_v2 = vld [vmem:[#allocation6 + $0x70] sm:$0xff] }
  0x1b   :  { %844 = vmatprep.subr.mxu0 %v1131_v0  ;;  %879 = vmatprep.subr.mxu1 %v1131_v0  ;;  %v65_v3 = vld [vmem:[#allocation6 + $0x68] sm:$0xff]  ;;  %v1166_v4 = vand.u32 4294901760, %v67_v1  ;;  %v1168_v5 = vand.u32 4294901760, %v66_v2  ;;  %v64_v7 = vld [vmem:[#allocation6 + $0x60] sm:$0xff]  ;;  %v63_v8 = vld [vmem:[#allocation6 + $0x58] sm:$0xff]  ;;  %s1133_s24 = smov [#allocation8]  }
  0x1c   :  { %876 = vmatprep.mubr.msk.f32.mxu0 %vm1132_vm0, %v1131_v0  ;;  %911 = vmatprep.mubr.msk.f32.mxu1 %vm1132_vm0, %v1131_v0  ;;  %v1170_v6 = vand.u32 4294901760, %v65_v3  ;;  %v62_v9 = vld [vmem:[#allocation6 + $0x50] sm:$0xff]  ;;  %v1172_v10 = vand.u32 4294901760, %v64_v7  ;;  %v1174_v11 = vand.u32 4294901760, %v63_v8  ;;  %v61_v13 = vld [vmem:[#allocation6 + $0x48] sm:$0xff]  ;;  %v60_v14 = vld [vmem:[#allocation6 + $0x40] sm:$0xff] }
  0x1d   :  { %v1176_v12 = vand.u32 4294901760, %v62_v9  ;;  %845 = vmatpush3.msra.mxu0 %v1166_v4  ;;  %v1180_v15 = vsub.f32 %v67_v1, %v1166_v4  ;;  %v1183_v16 = vsub.f32 %v66_v2, %v1168_v5  ;;  %v1185_v17 = vand.u32 4294901760, %v61_v13  ;;  %v59_v19 = vld [vmem:[#allocation6 + $0x38] sm:$0xff]  ;;  %v58_v26 = vld [vmem:[#allocation6 + $0x30] sm:$0xff]  ;;  %v57_v36 = vld [vmem:[#allocation6 + $0x28] sm:$0xff]  ;;  %s730_s25 = sshll.u32 %s1133_s24, 4  ;;  %s731_s25 = int_to_ptr.vmem [resolvable:$true] %s730_s25 }
  0x1e   :  { %v1188_v18 = vsub.f32 %v65_v3, %v1170_v6  ;;  %846 = vmatprep.subr.mxu0 %v1131_v0  ;;  %v1192_v20 = vsub.f32 %v64_v7, %v1172_v10  ;;  %v1195_v21 = vsub.f32 %v63_v8, %v1174_v11  ;;  %v1201_v25 = vand.u32 4294901760, %v60_v14  ;;  %v56_v41 = vld [vmem:[#allocation6 + $0x20] sm:$0xff]  ;;  %v55_v49 = vld [vmem:[#allocation6 + $0x18] sm:$0xff]  ;;  %v54_v54 = vld [vmem:[#allocation6 + $0x10] sm:$0xff]  ;;  %s1101_s26 = scalar_lea.vmem %s731_s25, 128  ;;  %p1106_p11 = scmp.lt.s32.totalorder %s731_s25, %s731_s25 }
  0x1f   :  { %847 = vmatpush3.msra.mxu0 %v1168_v5  ;;  %v162_v22 = vand.u32 4294901760, %v1180_v15  ;;  %v169_v23 = vand.u32 4294901760, %v1183_v16  ;;  %v1205_v28 = vand.u32 4294901760, %v59_v19  ;;  %v1209_v30 = vsub.f32 %v62_v9, %v1176_v12  ;;  %v50_v50 = vld [vmem:[#allocation3] sm:$0xff]  ;;  %v53_v60 = vld [vmem:[#allocation6 + $0x8] sm:$0xff]  ;;  %v52_v7 = vld [vmem:[#allocation6] sm:$0xff]  ;;  %p1102_p10 = scmp.ne.s32.totalorder %s731_s25, %s1101_s26  ;;  %p1107_p12 = scmp.lt.s32.totalorder %s1101_s26, %s1101_s26 }
  0x20   :  { %v176_v24 = vand.u32 4294901760, %v1188_v18  ;;  %848 = vmatprep.subr.mxu0 %v1131_v0  ;;  %v183_v27 = vand.u32 4294901760, %v1192_v20  ;;  %v190_v29 = vand.u32 4294901760, %v1195_v21  ;;  %v1222_v34 = vsub.f32 %v61_v13, %v1185_v17 }
  0x21   :  { %849 = vmatpush3.msra.mxu0 %v1170_v6  ;;  %v163_v31 = vsub.f32 %v1180_v15, %v162_v22  ;;  %v170_v32 = vsub.f32 %v1183_v16, %v169_v23  ;;  %v1225_v35 = vand.u32 4294901760, %v58_v26  ;;  %v197_v40 = vand.u32 4294901760, %v1209_v30  ;;  %p1108_p13 = por %p1107_p12, %p1106_p11 }
  0x22   :  { %v177_v33 = vsub.f32 %v1188_v18, %v176_v24  ;;  %850 = vmatprep.subr.mxu0 %v1131_v0  ;;  %v184_v39 = vsub.f32 %v1192_v20, %v183_v27  ;;  %v191_v42 = vsub.f32 %v1195_v21, %v190_v29  ;;  %v1237_v43 = vsub.f32 %v60_v14, %v1201_v25 }
  0x23   :  { %851 = vmatpush3.msra.mxu0 %v1172_v10  ;;  %v164_v37 = vand.u32 4294901760, %v163_v31  ;;  %v171_v38 = vand.u32 4294901760, %v170_v32  ;;  %v1240_v45 = vand.u32 4294901760, %v57_v36  ;;  %v204_v46 = vand.u32 4294901760, %v1222_v34  ;;  %p1109_p0 = pnand %p1108_p13, %p1102_p10 }
  0x24   :  { %852 = vmatprep.subr.mxu0 %v1131_v0  ;;  %v178_v44 = vand.u32 4294901760, %v177_v33  ;;  %v1244_v47 = vsub.f32 %v59_v19, %v1205_v28  ;;  %v1248_v48 = vand.u32 4294901760, %v56_v41  ;;  %v185_v51 = vand.u32 4294901760, %v184_v39 }
  0x25   :  { %853 = vmatpush3.msra.mxu0 %v1174_v11  ;;  %880 = vmatpush3.msra.mxu1 %v164_v37  ;;  %v198_v52 = vsub.f32 %v1209_v30, %v197_v40  ;;  %v211_v53 = vand.u32 4294901760, %v1237_v43  ;;  %v1256_v55 = vsub.f32 %v58_v26, %v1225_v35  ;;  %v192_v56 = vand.u32 4294901760, %v191_v42 }
  0x26   :  { %854 = vmatprep.subr.mxu0 %v1131_v0  ;;  %881 = vmatprep.subr.mxu1 %v1131_v0  ;;  %v218_v57 = vand.u32 4294901760, %v1244_v47  ;;  %v205_v58 = vsub.f32 %v1222_v34, %v204_v46  ;;  %v1265_v59 = vand.u32 4294901760, %v55_v49  ;;  %v1268_v61 = vsub.f32 %v57_v36, %v1240_v45 }
  0x27   :  { %855 = vmatpush3.msra.mxu0 %v1176_v12  ;;  %882 = vmatpush3.msra.mxu1 %v171_v38  ;;  %v1270_v62 = vand.u32 4294901760, %v50_v50  ;;  %v1274_v63 = vand.u32 4294901760, %v54_v54  ;;  %v199_v1 = vand.u32 4294901760, %v198_v52  ;;  %v212_v2 = vsub.f32 %v1237_v43, %v211_v53 }
  0x28   :  { %856 = vmatprep.subr.mxu0 %v1131_v0  ;;  %883 = vmatprep.subr.mxu1 %v1131_v0  ;;  %v225_v3 = vand.u32 4294901760, %v1256_v55  ;;  %v1282_v8 = vsub.f32 %v56_v41, %v1248_v48  ;;  %v219_v9 = vsub.f32 %v1244_v47, %v218_v57  ;;  %v1289_v13 = vand.u32 4294901760, %v53_v60 }
  0x29   :  { %857 = vmatpush3.msra.mxu0 %v1185_v17  ;;  %884 = vmatpush3.msra.mxu1 %v178_v44  ;;  %v206_v14 = vand.u32 4294901760, %v205_v58  ;;  %v232_v19 = vand.u32 4294901760, %v1268_v61  ;;  %v1294_v26 = vsub.f32 %v50_v50, %v1270_v62  ;;  %v1297_v31 = vsub.f32 %v55_v49, %v1265_v59 }
  0x2a   :  { %858 = vmatprep.subr.mxu0 %v1131_v0  ;;  %885 = vmatprep.subr.mxu1 %v1131_v0  ;;  %v1301_v32 = vand.u32 4294901760, %v52_v7  ;;  %v213_v33 = vand.u32 4294901760, %v212_v2  ;;  %v226_v36 = vsub.f32 %v1256_v55, %v225_v3  ;;  %v239_v37 = vand.u32 4294901760, %v1282_v8 }
  0x2b   :  { %859 = vmatpush3.msra.mxu0 %v1201_v25  ;;  %886 = vmatpush3.msra.mxu1 %v185_v51  ;;  %v1309_v38 = vsub.f32 %v54_v54, %v1274_v63  ;;  %v220_v39 = vand.u32 4294901760, %v219_v9  ;;  %v233_v41 = vsub.f32 %v1268_v61, %v232_v19  ;;  %v151_v42 = vand.u32 4294901760, %v1294_v26 }
  0x2c   :  { %860 = vmatprep.subr.mxu0 %v1131_v0  ;;  %887 = vmatprep.subr.mxu1 %v1131_v0  ;;  %v246_v44 = vand.u32 4294901760, %v1297_v31  ;;  %v1320_v49 = vsub.f32 %v53_v60, %v1289_v13  ;;  %v227_v50 = vand.u32 4294901760, %v226_v36  ;;  %v240_v51 = vsub.f32 %v1282_v8, %v239_v37 }
  0x2d   :  { %861 = vmatpush3.msra.mxu0 %v1205_v28  ;;  %888 = vmatpush3.msra.mxu1 %v192_v56  ;;  %v253_v52 = vand.u32 4294901760, %v1309_v38  ;;  %v1330_v54 = vsub.f32 %v52_v7, %v1301_v32  ;;  %v234_v56 = vand.u32 4294901760, %v233_v41  ;;  %v152_v58 = vsub.f32 %v1294_v26, %v151_v42 }
  0x2e   :  { %862 = vmatprep.subr.mxu0 %v1131_v0  ;;  %889 = vmatprep.subr.mxu1 %v1131_v0  ;;  %v247_v60 = vsub.f32 %v1297_v31, %v246_v44  ;;  %v241_v2 = vand.u32 4294901760, %v240_v51 }
  0x2f   :  { %863 = vmatpush3.msra.mxu0 %v1225_v35  ;;  %890 = vmatpush3.msra.mxu1 %v199_v1  ;;  %v260_v1 = vand.u32 4294901760, %v1320_v49  ;;  %v254_v7 = vsub.f32 %v1309_v38, %v253_v52  ;;  %v267_v9 = vand.u32 4294901760, %v1330_v54 }
  0x30   :  { %864 = vmatprep.subr.mxu0 %v1131_v0  ;;  %891 = vmatprep.subr.mxu1 %v1131_v0 }
  0x31   :  { %865 = vmatpush3.msra.mxu0 %v1240_v45  ;;  %892 = vmatpush3.msra.mxu1 %v206_v14  ;;  %v153_v14 = vand.u32 4294901760, %v152_v58  ;;  %v261_v36 = vsub.f32 %v1320_v49, %v260_v1  ;;  %v268_v41 = vsub.f32 %v1330_v54, %v267_v9 }
  0x32   :  { %866 = vmatprep.subr.mxu0 %v1131_v0  ;;  %893 = vmatprep.subr.mxu1 %v1131_v0 }
  0x33   :  { %867 = vmatpush3.msra.mxu0 %v1248_v48  ;;  %894 = vmatpush3.msra.mxu1 %v213_v33  ;;  %v248_v33 = vand.u32 4294901760, %v247_v60  ;;  %v269_v51 = vand.u32 4294901760, %v268_v41 }
  0x34   :  { %868 = vmatprep.subr.mxu0 %v1131_v0  ;;  %895 = vmatprep.subr.mxu1 %v1131_v0 }
  0x35   :  { %869 = vmatpush3.msra.mxu0 %v1265_v59  ;;  %896 = vmatpush3.msra.mxu1 %v220_v39  ;;  %v255_v39 = vand.u32 4294901760, %v254_v7 }
  0x36   :  { %870 = vmatprep.subr.mxu0 %v1131_v0  ;;  %897 = vmatprep.subr.mxu1 %v1131_v0 }
  0x37   :  { %871 = vmatpush3.msra.mxu0 %v1274_v63  ;;  %898 = vmatpush3.msra.mxu1 %v227_v50  ;;  %v262_v50 = vand.u32 4294901760, %v261_v36 }
  0x38   :  { %872 = vmatprep.subr.mxu0 %v1131_v0  ;;  %899 = vmatprep.subr.mxu1 %v1131_v0 }
  0x39   :  { %873 = vmatpush3.msra.mxu0 %v1289_v13  ;;  %900 = vmatpush3.msra.mxu1 %v234_v56 }
  0x3a   :  { %874 = vmatprep.subr.mxu0 %v1131_v0  ;;  %901 = vmatprep.subr.mxu1 %v1131_v0 }
  0x3b   :  { %875 = vmatpush3.msra.mxu0 %v1301_v32  ;;  %902 = vmatpush3.msra.mxu1 %v241_v2 }
  0x3c   :  { %903 = vmatprep.subr.mxu1 %v1131_v0  ;;  %914 = vmatprep.subr.mxu0 %v1131_v0 }
  0x3d   :  { %877 = vmatmul.mubr.f32.vlgmr.msra.gmra.mxu0 %v153_v14  ;;  %904 = vmatpush3.msra.mxu1 %v248_v33 }
  0x3e   :  { %915 = vmatpush3.msra.mxu0 %v1180_v15  ;;  %905 = vmatprep.subr.mxu1 %v1131_v0 }
  0x3f   :  { %916 = vmatprep.subr.mxu0 %v1131_v0  ;;  %906 = vmatpush3.msra.mxu1 %v255_v39 }
  0x40   :  { %917 = vmatpush3.msra.mxu0 %v1183_v16  ;;  %907 = vmatprep.subr.mxu1 %v1131_v0 }
  0x41   :  { %918 = vmatprep.subr.mxu0 %v1131_v0  ;;  %908 = vmatpush3.msra.mxu1 %v262_v50 }
  0x42   :  { %919 = vmatpush3.msra.mxu0 %v1188_v18  ;;  %909 = vmatprep.subr.mxu1 %v1131_v0 }
  0x43   :  { %920 = vmatprep.subr.mxu0 %v1131_v0  ;;  %910 = vmatpush3.msra.mxu1 %v269_v51 }
  0x44   :  { %921 = vmatpush3.msra.mxu0 %v1192_v20  ;;  %912 = vmatmul.mubr.f32.vlgmr.msra.gmra.mxu1 %v1270_v62 }
  0x45   :  { %922 = vmatprep.subr.mxu0 %v1131_v0  ;;  %949 = vmatprep.subr.mxu1 %v1131_v0 }
  0x46   :  { %923 = vmatpush3.msra.mxu0 %v1195_v21  ;;  %950 = vmatpush3.msra.mxu1 %v1166_v4 }
  0x47   :  { %924 = vmatprep.subr.mxu0 %v1131_v0  ;;  %951 = vmatprep.subr.mxu1 %v1131_v0 }
  0x48   :  { %925 = vmatpush3.msra.mxu0 %v1209_v30  ;;  %952 = vmatpush3.msra.mxu1 %v1168_v5 }
  0x49   :  { %926 = vmatprep.subr.mxu0 %v1131_v0  ;;  %953 = vmatprep.subr.mxu1 %v1131_v0 }
  0x4a   :  { %927 = vmatpush3.msra.mxu0 %v1222_v34  ;;  %954 = vmatpush3.msra.mxu1 %v1170_v6 }
  0x4b   :  { %928 = vmatprep.subr.mxu0 %v1131_v0  ;;  %955 = vmatprep.subr.mxu1 %v1131_v0 }
  0x4c   :  { %929 = vmatpush3.msra.mxu0 %v1237_v43  ;;  %956 = vmatpush3.msra.mxu1 %v1172_v10 }
  0x4d   :  { %930 = vmatprep.subr.mxu0 %v1131_v0  ;;  %957 = vmatprep.subr.mxu1 %v1131_v0 }
  0x4e   :  { %931 = vmatpush3.msra.mxu0 %v1244_v47  ;;  %958 = vmatpush3.msra.mxu1 %v1174_v11 }
  0x4f   :  { %932 = vmatprep.subr.mxu0 %v1131_v0  ;;  %959 = vmatprep.subr.mxu1 %v1131_v0 }
  0x50   :  { %933 = vmatpush3.msra.mxu0 %v1256_v55  ;;  %960 = vmatpush3.msra.mxu1 %v1176_v12 }
  0x51   :  { %934 = vmatprep.subr.mxu0 %v1131_v0  ;;  %961 = vmatprep.subr.mxu1 %v1131_v0 }
  0x52   :  { %935 = vmatpush3.msra.mxu0 %v1268_v61  ;;  %962 = vmatpush3.msra.mxu1 %v1185_v17 }
  0x53   :  { %936 = vmatprep.subr.mxu0 %v1131_v0  ;;  %963 = vmatprep.subr.mxu1 %v1131_v0 }
  0x54   :  { %937 = vmatpush3.msra.mxu0 %v1282_v8  ;;  %964 = vmatpush3.msra.mxu1 %v1201_v25 }
  0x55   :  { %938 = vmatprep.subr.mxu0 %v1131_v0  ;;  %965 = vmatprep.subr.mxu1 %v1131_v0 }
  0x56   :  { %939 = vmatpush3.msra.mxu0 %v1297_v31  ;;  %966 = vmatpush3.msra.mxu1 %v1205_v28 }
  0x57   :  { %940 = vmatprep.subr.mxu0 %v1131_v0  ;;  %967 = vmatprep.subr.mxu1 %v1131_v0 }
  0x58   :  { %941 = vmatpush3.msra.mxu0 %v1309_v38  ;;  %968 = vmatpush3.msra.mxu1 %v1225_v35 }
  0x59   :  { %942 = vmatprep.subr.mxu0 %v1131_v0  ;;  %969 = vmatprep.subr.mxu1 %v1131_v0 }
  0x5a   :  { %943 = vmatpush3.msra.mxu0 %v1320_v49  ;;  %970 = vmatpush3.msra.mxu1 %v1240_v45 }
  0x5b   :  { %944 = vmatprep.subr.mxu0 %v1131_v0  ;;  %971 = vmatprep.subr.mxu1 %v1131_v0 }
  0x5c   :  { %945 = vmatpush3.msra.mxu0 %v1330_v54  ;;  %946 = vmatprep.mubr.msk.f32.mxu0 %vm1132_vm0, %v1131_v0 }
  0x5d   :  { %972 = vmatpush3.msra.mxu1 %v1248_v48  ;;  %947 = vmatmul.mubr.f32.vlgmr.msra.gmra.mxu0 %v1294_v26 }
  0x5e   :  { %973 = vmatprep.subr.mxu1 %v1131_v0  ;;  %984 = vmatprep.subr.mxu0 %v1131_v0 }
  0x5f   :  { %974 = vmatpush3.msra.mxu1 %v1265_v59  ;;  %985 = vmatpush3.msra.mxu0 %v162_v22 }
  0x60   :  { %975 = vmatprep.subr.mxu1 %v1131_v0  ;;  %986 = vmatprep.subr.mxu0 %v1131_v0 }
  0x61   :  { %976 = vmatpush3.msra.mxu1 %v1274_v63  ;;  %987 = vmatpush3.msra.mxu0 %v169_v23 }
  0x62   :  { %977 = vmatprep.subr.mxu1 %v1131_v0  ;;  %988 = vmatprep.subr.mxu0 %v1131_v0 }
  0x63   :  { %978 = vmatpush3.msra.mxu1 %v1289_v13  ;;  %989 = vmatpush3.msra.mxu0 %v176_v24 }
  0x64   :  { %979 = vmatprep.subr.mxu1 %v1131_v0  ;;  %990 = vmatprep.subr.mxu0 %v1131_v0 }
  0x65   :  { %980 = vmatpush3.msra.mxu1 %v1301_v32  ;;  %981 = vmatprep.mubr.msk.f32.mxu1 %vm1132_vm0, %v1131_v0 }
  0x66   :  { %991 = vmatpush3.msra.mxu0 %v183_v27  ;;  %982 = vmatmul.mubr.f32.vlgmr.msra.gmra.mxu1 %v151_v42 }
  0x67   :  { %992 = vmatprep.subr.mxu0 %v1131_v0  ;;  %1019 = vmatprep.subr.mxu1 %v1131_v0 }
  0x68   :  { %993 = vmatpush3.msra.mxu0 %v190_v29  ;;  %1020 = vmatpush3.msra.mxu1 %v1166_v4 }
  0x69   :  { %994 = vmatprep.subr.mxu0 %v1131_v0  ;;  %1021 = vmatprep.subr.mxu1 %v1131_v0 }
  0x6a   :  { %995 = vmatpush3.msra.mxu0 %v197_v40  ;;  %1022 = vmatpush3.msra.mxu1 %v1168_v5 }
  0x6b   :  { %996 = vmatprep.subr.mxu0 %v1131_v0  ;;  %1023 = vmatprep.subr.mxu1 %v1131_v0 }
  0x6c   :  { %997 = vmatpush3.msra.mxu0 %v204_v46  ;;  %1024 = vmatpush3.msra.mxu1 %v1170_v6 }
  0x6d   :  { %998 = vmatprep.subr.mxu0 %v1131_v0  ;;  %1025 = vmatprep.subr.mxu1 %v1131_v0 }
  0x6e   :  { %999 = vmatpush3.msra.mxu0 %v211_v53  ;;  %1026 = vmatpush3.msra.mxu1 %v1172_v10 }
  0x6f   :  { %1000 = vmatprep.subr.mxu0 %v1131_v0  ;;  %1027 = vmatprep.subr.mxu1 %v1131_v0 }
  0x70   :  { %1001 = vmatpush3.msra.mxu0 %v218_v57  ;;  %1028 = vmatpush3.msra.mxu1 %v1174_v11 }
  0x71   :  { %1002 = vmatprep.subr.mxu0 %v1131_v0  ;;  %1029 = vmatprep.subr.mxu1 %v1131_v0 }
  0x72   :  { %1003 = vmatpush3.msra.mxu0 %v225_v3  ;;  %1030 = vmatpush3.msra.mxu1 %v1176_v12 }
  0x73   :  { %1004 = vmatprep.subr.mxu0 %v1131_v0  ;;  %1031 = vmatprep.subr.mxu1 %v1131_v0 }
  0x74   :  { %1005 = vmatpush3.msra.mxu0 %v232_v19  ;;  %1032 = vmatpush3.msra.mxu1 %v1185_v17 }
  0x75   :  { %1006 = vmatprep.subr.mxu0 %v1131_v0  ;;  %1033 = vmatprep.subr.mxu1 %v1131_v0 }
  0x76   :  { %1007 = vmatpush3.msra.mxu0 %v239_v37  ;;  %1034 = vmatpush3.msra.mxu1 %v1201_v25 }
  0x77   :  { %1008 = vmatprep.subr.mxu0 %v1131_v0  ;;  %1035 = vmatprep.subr.mxu1 %v1131_v0 }
  0x78   :  { %1009 = vmatpush3.msra.mxu0 %v246_v44  ;;  %1036 = vmatpush3.msra.mxu1 %v1205_v28 }
  0x79   :  { %1010 = vmatprep.subr.mxu0 %v1131_v0  ;;  %1037 = vmatprep.subr.mxu1 %v1131_v0 }
  0x7a   :  { %1011 = vmatpush3.msra.mxu0 %v253_v52  ;;  %1038 = vmatpush3.msra.mxu1 %v1225_v35 }
  0x7b   :  { %1012 = vmatprep.subr.mxu0 %v1131_v0  ;;  %1039 = vmatprep.subr.mxu1 %v1131_v0 }
  0x7c   :  { %1013 = vmatpush3.msra.mxu0 %v260_v1  ;;  %1040 = vmatpush3.msra.mxu1 %v1240_v45 }
  0x7d   :  { %1014 = vmatprep.subr.mxu0 %v1131_v0  ;;  %1041 = vmatprep.subr.mxu1 %v1131_v0 }
  0x7e   :  { %1015 = vmatpush3.msra.mxu0 %v267_v9  ;;  %1016 = vmatprep.mubr.msk.f32.mxu0 %vm1132_vm0, %v1131_v0 }
  0x7f   :  { %1042 = vmatpush3.msra.mxu1 %v1248_v48  ;;  %1017 = vmatmul.mubr.f32.vlgmr.msra.gmra.mxu0 %v1270_v62 }
  0x80   :  { %1043 = vmatprep.subr.mxu1 %v1131_v0  ;;  %1051 = vmatprep.mubr.msk.f32.mxu1 %vm1132_vm0, %v1131_v0 }
  0x81   :  { %1044 = vmatpush3.msra.mxu1 %v1265_v59 }
  0x82   :  { %1045 = vmatprep.subr.mxu1 %v1131_v0 }
  0x83   :  { %1046 = vmatpush3.msra.mxu1 %v1274_v63 }
  0x84   :  { %1047 = vmatprep.subr.mxu1 %v1131_v0 }
  0x85   :  { %1048 = vmatpush3.msra.mxu1 %v1289_v13 }
  0x86   :  { %1049 = vmatprep.subr.mxu1 %v1131_v0  ;;  %v741_v0 = vld [vmem:[%s1531_s2] ss:$0 sm:$0xff] }
  0x87   :  { %1050 = vmatpush3.msra.mxu1 %v1301_v32 }
  0x88   :  { %1052 = vmatmul.mubr.f32.vlgmr.msra.gmra.mxu1 %v1270_v62 }
  0xfd   :  { %v155_v4 = vpop.f32.mrf.mxu0 }
  0xff   :  { %v878_v5 = vpop.f32.mrf.mxu0 }
 0x104   :  { %v306_v6 = vpop.f32.mrf.mxu1 }
 0x105   :  { %v307_v18 = vadd.f32 %v306_v6, %v155_v4 }
 0x106   :  { %v913_v10 = vpop.f32.mrf.mxu1 }
 0x11d   :  { %v410_v11 = vpop.f32.mrf.mxu0 }
 0x11e   :  { %v411_v21 = vadd.f32 %v410_v11, %v307_v18 }
 0x11f   :  { %v948_v12 = vpop.f32.mrf.mxu0 }
 0x126   :  { %v499_v15 = vpop.f32.mrf.mxu1 }
 0x127   :  { %v500_v22 = vadd.f32 %v499_v15, %v411_v21 }
 0x128   :  { %v983_v16 = vpop.f32.mrf.mxu1 }
 0x13f   :  { %v618_v17 = vpop.f32.mrf.mxu0 }
 0x140   :  { %v619_v23 = vadd.f32 %v618_v17, %v500_v22 }
 0x141   :  { %v1018_v20 = vpop.f32.mrf.mxu0 }
 0x148   :  { %v705_v24 = vpop.f32.mrf.mxu1 }
 0x149   :  { %v706_v25 = vadd.f32 %v705_v24, %v619_v23 }
 0x14a   :  { %v1053_v27 = vpop.f32.mrf.mxu1 }
 0x14b   :  { %v722_v28 = vadd.f32 %v741_v0, %v706_v25 }
 0x14d   :  { %723 = vst [vmem:[#allocation8] sm:$0xff] %v722_v28 }
 0x14e   :  { %1112 = shalt.err (!%p1109_p0)
}
 0x14f   :  { %733 = dma.vmem_to_hbm [thread:$0]  %s731_s25, 128, %s1532_s3, [#allocation5]  }
 0x150   :  { %1125 = dma.done.wait [#allocation5], 128  }
 0x151   :  { %1126 = vsyncadd [#allocation5], 4294967168 }
 0x152   :  { %737 = vsyncpa [#allocation4], 1 }
 0x153   :  { %738 = vsyncpa [#allocation7], 1 }
 0x154   :  { %739 = vsyncpa [#allocation5], 1 }

</bundles_post_ra>
